<compile_context>
chip_gen: v6e
topology: v6e:2x2x1
jax: 0.10.0
libtpu: 0.0.40
codegen_flags: <defaults>
</compile_context>

<pallas_src>
import jax
import jax.numpy as jnp
from jax.experimental import pallas as pl
from jax.experimental.pallas import tpu as pltpu


def _round_up(v, m):
    return (v + m - 1) // m * m


def lr_kernel(x_ref, wt_ref, b_ref, o_ref):
    # x : (TILE_B, D)   native dtype (f32/bf16 -> MXU consumes directly)
    # wt: (D, O_pad)    pre-transposed weight (K on sublanes, N on lanes)
    # b : (1, O_pad)    f32; padded lanes hold -1e30 so exp() underflows to 0
    logits = jnp.dot(x_ref[...], wt_ref[...],
                     preferred_element_type=jnp.float32) + b_ref[...]
    # Numerically stable log-softmax over the feature (lane) axis.
    m = jnp.max(logits, axis=1, keepdims=True)
    z = logits - m
    lse = jnp.log(jnp.sum(jnp.exp(z), axis=1, keepdims=True))
    o_ref[...] = (z - lse).astype(o_ref.dtype)


def lr_forward(x, w, b, *, tile_b=None):
    """x: (B, D), w: (O, D) (PyTorch nn.Linear layout), b: (O,).
    Returns (B, O) log-probabilities = log_softmax(x @ w.T + b, axis=1)."""
    B, D = x.shape
    O = w.shape[0]

    # Lane-dense output slab: pad feature axis up to a multiple of 128.
    O_pad = _round_up(O, 128)
    # Pre-transpose the weight so the MXU gets its natural RHS layout.
    wt = jnp.zeros((D, O_pad), w.dtype).at[:, :O].set(w.T)
    # Padded bias lanes get a huge negative -> they contribute 0 to the softmax.
    b_pad = jnp.full((1, O_pad), -1e30, jnp.float32).at[0, :O].set(
        b.astype(jnp.float32))

    # Batch tile: multiple of 8 (sublane); pad the batch so the grid divides.
    if tile_b is None:
        tile_b = min(256, _round_up(B, 8))
    tile_b = _round_up(tile_b, 8)
    B_pad = _round_up(B, tile_b)
    x_p = x if B_pad == B else jnp.zeros((B_pad, D), x.dtype).at[:B, :].set(x)

    grid = (B_pad // tile_b,)

    # VMEM budget: double-buffered x/out tiles + resident weight/bias, with
    # 2x margin, clamped to [16 MiB, 64 MiB] (v7x physical ceiling).
    itemsize = jnp.dtype(x.dtype).itemsize
    vmem_bytes = (2 * tile_b * D * itemsize        # x tiles (double-buffered)
                  + 2 * tile_b * O_pad * itemsize  # out tiles (double-buffered)
                  + D * O_pad * jnp.dtype(w.dtype).itemsize  # resident weight
                  + O_pad * 4)                     # resident bias
    vmem_limit = int(min(max(2 * vmem_bytes, 16 << 20), 64 << 20))

    out_pad = pl.pallas_call(
        lr_kernel,
        out_shape=jax.ShapeDtypeStruct((B_pad, O_pad), x.dtype),
        grid_spec=pltpu.PrefetchScalarGridSpec(
            num_scalar_prefetch=0,
            grid=grid,
            in_specs=[
                pl.BlockSpec((tile_b, D), lambda i: (i, 0)),   # x: streamed over batch
                pl.BlockSpec((D, O_pad), lambda i: (0, 0)),    # weight: VMEM-resident
                pl.BlockSpec((1, O_pad), lambda i: (0, 0)),    # bias:   VMEM-resident
            ],
            out_specs=pl.BlockSpec((tile_b, O_pad), lambda i: (i, 0)),
        ),
        compiler_params=pltpu.CompilerParams(
            dimension_semantics=("parallel",),
            vmem_limit_bytes=vmem_limit,
        ),
    )(x_p, wt, b_pad)

    # Slice away the batch / lane padding.
    return out_pad[:B, :O]


def init_lr_params(key, input_size, output_size):
    """Deterministic init mirroring nn.Linear default (uniform +-1/sqrt(fan_in))."""
    kw, kb = jax.random.split(key)
    bound = 1.0 / jnp.sqrt(jnp.float32(input_size))
    w = jax.random.uniform(kw, (output_size, input_size), jnp.float32, -bound, bound)
    b = jax.random.uniform(kb, (output_size,), jnp.float32, -bound, bound)
    return w, b


if __name__ == "__main__":
    key = jax.random.PRNGKey(0)
    k_x, k_p = jax.random.split(key)

    batch = 8
    input_size = 32
    output_size = 2

    x = jax.random.normal(k_x, (batch, input_size), jnp.float32)
    w, b = init_lr_params(k_p, input_size, output_size)

    out = jax.block_until_ready(lr_forward(x, w, b))

    # sanity: reference in plain JAX
    ref = jax.nn.log_softmax(x @ w.T + b, axis=1)
    assert out.shape == (batch, output_size)
    assert jnp.allclose(out, ref, atol=1e-5), "mismatch vs reference"

    print("KERNEL_OK")
</pallas_src>

<mosaic_0001>
module attributes {stable_mosaic.version = 11 : i64} {
  func.func @lr_kernel(%arg0: i32, %arg1: memref<8x32xf32, #tpu.memory_space<vmem>>, %arg2: memref<32x128xf32, #tpu.memory_space<vmem>>, %arg3: memref<1x128xf32, #tpu.memory_space<vmem>>, %arg4: memref<8x128xf32, #tpu.memory_space<vmem>>) attributes {dimension_semantics = [#tpu.dimension_semantics<parallel>], iteration_bounds = array<i64: 1>, scalar_prefetch = 0 : i64, scratch_operands = 0 : i64, tpu.core_type = #tpu.core_type<tc>, window_params = [{transform_indices = @transform_0, window_bounds = array<i64: 8, 32>}, {pipeline_mode = #tpu.pipeline_mode<synchronous>, transform_indices = @transform_1, window_bounds = array<i64: 32, 128>}, {pipeline_mode = #tpu.pipeline_mode<synchronous>, transform_indices = @transform_2, window_bounds = array<i64: 1, 128>}, {transform_indices = @transform_3, window_bounds = array<i64: 8, 128>}]} {
    %c0 = arith.constant 0 : index
    %c0_0 = arith.constant 0 : index
    %0 = vector.load %arg1[%c0, %c0_0] : memref<8x32xf32, #tpu.memory_space<vmem>>, vector<8x32xf32>
    %c0_1 = arith.constant 0 : index
    %c0_2 = arith.constant 0 : index
    %1 = vector.load %arg2[%c0_1, %c0_2] : memref<32x128xf32, #tpu.memory_space<vmem>>, vector<32x128xf32>
    %cst = arith.constant dense<0.000000e+00> : vector<8x128xf32>
    %2 = tpu.matmul %0, %1, %cst {dimension_numbers = #tpu.dot_dimension_numbers<[1], [0], [0], [1], [0, 0, 1, 1], [], []>} : vector<8x32xf32>, vector<32x128xf32>, vector<8x128xf32> -> vector<8x128xf32>
    %c0_3 = arith.constant 0 : index
    %c0_4 = arith.constant 0 : index
    %3 = vector.load %arg3[%c0_3, %c0_4] : memref<1x128xf32, #tpu.memory_space<vmem>>, vector<1x128xf32>
    %4 = vector.broadcast %3 : vector<1x128xf32> to vector<8x128xf32>
    %5 = arith.addf %2, %4 : vector<8x128xf32>
    %cst_5 = arith.constant dense<0xFF800000> : vector<8xf32>
    %6 = vector.multi_reduction <maximumf>, %5, %cst_5 [1] : vector<8x128xf32> to vector<8xf32>
    %7 = vector.shape_cast %6 : vector<8xf32> to vector<8x1xf32>
    %8 = vector.broadcast %7 : vector<8x1xf32> to vector<8x128xf32>
    %9 = arith.subf %5, %8 : vector<8x128xf32>
    %10 = math.exp %9 : vector<8x128xf32>
    %cst_6 = arith.constant dense<0.000000e+00> : vector<8xf32>
    %11 = vector.multi_reduction <add>, %10, %cst_6 [1] : vector<8x128xf32> to vector<8xf32>
    %12 = vector.shape_cast %11 : vector<8xf32> to vector<8x1xf32>
    %13 = math.log %12 : vector<8x1xf32>
    %14 = vector.broadcast %13 : vector<8x1xf32> to vector<8x128xf32>
    %15 = arith.subf %9, %14 : vector<8x128xf32>
    %c0_7 = arith.constant 0 : index
    %c0_8 = arith.constant 0 : index
    %16 = vector.load %arg4[%c0_7, %c0_8] : memref<8x128xf32, #tpu.memory_space<vmem>>, vector<8x128xf32>
    tpu.vector_store %arg4[%c0_7, %c0_8], %15 {strides = array<i32>} : memref<8x128xf32, #tpu.memory_space<vmem>>, vector<8x128xf32>,
    return
  }
  func.func @transform_0(%arg0: i32) -> (i32, i32) {
    %c0_i32 = arith.constant 0 : i32
    %c0_i32_0 = arith.constant 0 : i32
    return %arg0, %c0_i32 : i32, i32
  }
  func.func @transform_1(%arg0: i32) -> (i32, i32) {
    %c0_i32 = arith.constant 0 : i32
    %c0_i32_0 = arith.constant 0 : i32
    %c0_i32_1 = arith.constant 0 : i32
    return %c0_i32, %c0_i32_0 : i32, i32
  }
  func.func @transform_2(%arg0: i32) -> (i32, i32) {
    %c0_i32 = arith.constant 0 : i32
    %c0_i32_0 = arith.constant 0 : i32
    %c0_i32_1 = arith.constant 0 : i32
    return %c0_i32, %c0_i32_0 : i32, i32
  }
  func.func @transform_3(%arg0: i32) -> (i32, i32) {
    %c0_i32 = arith.constant 0 : i32
    %c0_i32_0 = arith.constant 0 : i32
    return %arg0, %c0_i32 : i32, i32
  }
}

</mosaic_0001>

<bundles_post_ra>
// kernel: tpu_custom_call.1
= control target key start
LH: loop header
LB: loop body
LE: loop exit
PB: predicated region body
PF: predicated region fallthrough
CT: control target
= control target key end

     0   :  { %8 = vsyncpa [#allocation3], 0  ;;  %s288_s0 = inlined_call_operand.hbm [shape: f32[8,32], index: 0, kind: input, shape index: {}]   ;;  %s289_s1 = inlined_call_operand.hbm [shape: f32[32,128], index: 1, kind: input, shape index: {}]   ;;  %s290_s2 = inlined_call_operand.vmem [shape: f32[1,128], index: 2, kind: input, shape index: {}]   ;;  %s291_s3 = inlined_call_operand.hbm [shape: f32[8,128], index: 3, kind: output, shape index: {}]  }
   0x1   :  { %9 = vsyncpa [#allocation6], 0 }
   0x2   :  { %10 = vsyncpa [#allocation4], 0  ;;  %s249_s12 = smov [#allocation2]   ;;  %s250_s14 = smov [#allocation5]  }
   0x3   :  { %s17_s13 = sshll.u32 %s249_s12, 4  ;;  %s26_s15 = sshll.u32 %s250_s14, 4  ;;  %s18_s13 = int_to_ptr.vmem [resolvable:$true] %s17_s13  ;;  %s27_s15 = int_to_ptr.vmem [resolvable:$true] %s26_s15 }
   0x4   :  { %s191_s16 = scalar_lea.vmem %s18_s13, 128  ;;  %p196_p1 = scmp.lt.s32.totalorder %s18_s13, %s18_s13 }
   0x5   :  { %p192_p0 = scmp.ne.s32.totalorder %s18_s13, %s191_s16  ;;  %p197_p2 = scmp.lt.s32.totalorder %s191_s16, %s191_s16 }
   0x7   :  { %p198_p3 = por %p197_p2, %p196_p1 }
   0x9   :  { %p199_p4 = pnand %p198_p3, %p192_p0 }
   0xb   :  { %202 = shalt.err (!%p199_p4)
}
   0xc   :  { %20 = dma.hbm_to_vmem [thread:$0]  %s288_s0, 128, %s18_s13, [#allocation3]  }
   0xd   :  { %s211_s19 = scalar_lea.vmem %s27_s15, 512  ;;  %p216_p6 = scmp.lt.s32.totalorder %s27_s15, %s27_s15 }
   0xe   :  { %p212_p5 = scmp.ne.s32.totalorder %s27_s15, %s211_s19  ;;  %p217_p7 = scmp.lt.s32.totalorder %s211_s19, %s211_s19 }
  0x10   :  { %p218_p8 = por %p217_p7, %p216_p6 }
  0x12   :  { %p219_p9 = pnand %p218_p8, %p212_p5 }
  0x14   :  { %222 = shalt.err (!%p219_p9)
}
  0x15   :  { %s251_s20 = smov 128   ;;  %s252_s21 = smov 8  }
  0x16   :  { %32 = dma.hbm_to_vmem [thread:$0]  %s289_s1, 512, %s27_s15, [#allocation6], %s251_s20, %s251_s20, %s252_s21  }
  0x17   :  { %243 = dma.done.wait [#allocation3], 128  }
  0x18   :  { %244 = vsyncadd [#allocation3], 4294967168 }
  0x19   :  { %245 = dma.done.wait [#allocation6], 512  }
  0x1a   :  { %246 = vsyncadd [#allocation6], 4294966784  ;;  %v253_v0 = vmov 0.0   ;;  %vm254_vm0 = vmmov 0   ;;  %v45_v1 = vld [vmem:[#allocation5 + $0x18] sm:$0xff]  ;;  %v44_v2 = vld [vmem:[#allocation5 + $0x10] sm:$0xff] }
  0x1b   :  { %161 = vmatprep.subr.mxu0 %v253_v0  ;;  %169 = vmatprep.mubr.msk.f32.mxu0 %vm254_vm0, %v253_v0  ;;  %v43_v3 = vld [vmem:[#allocation5 + $0x8] sm:$0xff]  ;;  %v42_v4 = vld [vmem:[#allocation5] sm:$0xff]  ;;  %v41_v5 = vld [vmem:[#allocation2] sm:$0xff]  ;;  %vm53_vm1 = vcmask 261120   ;;  %s255_s24 = smov [#allocation7]  }
  0x1c   :  { %162 = vmatpush3.msra.mxu0 %v45_v1  ;;  %v154_v6 = vld [vmem:[%s290_s2] ss:$0 sm:$0xff]  ;;  %s144_s25 = sshll.u32 %s255_s24, 4  ;;  %s145_s25 = int_to_ptr.vmem [resolvable:$true] %s144_s25 }
  0x1d   :  { %163 = vmatprep.subr.mxu0 %v253_v0  ;;  %s223_s2 = scalar_lea.vmem %s145_s25, 128  ;;  %p228_p11 = scmp.lt.s32.totalorder %s145_s25, %s145_s25 }
  0x1e   :  { %164 = vmatpush3.msra.mxu0 %v44_v2  ;;  %p224_p10 = scmp.ne.s32.totalorder %s145_s25, %s223_s2  ;;  %p229_p12 = scmp.lt.s32.totalorder %s223_s2, %s223_s2 }
  0x1f   :  { %165 = vmatprep.subr.mxu0 %v253_v0 }
  0x20   :  { %166 = vmatpush3.msra.mxu0 %v43_v3  ;;  %p230_p13 = por %p229_p12, %p228_p11 }
  0x21   :  { %167 = vmatprep.subr.mxu0 %v253_v0 }
  0x22   :  { %168 = vmatpush3.msra.mxu0 %v42_v4  ;;  %p231_p0 = pnand %p230_p13, %p224_p10 }
  0x23   :  { %170 = vmatmul.mubr.msk.f32.vlgmr.msra.gmra.mxu0 %vm53_vm1, %v41_v5 }
  0xe3   :  { %v123_v7 = vpop.f32.mrf.mxu0 }
  0xe4   :  { %v124_v8 = vadd.f32 %v154_v6, %v123_v7 }
  0xe5   :  { %v171_v9 = vpop.f32.mrf.mxu0 }
  0xe6   :  { %127 = vmax.xlane.f32.xlu0 %v124_v8 }
 0x16f   :  { %v128_v10 = vpop.xlane.xlu0 %127 }
 0x170   :  { %v129_v11 = vsub.f32 %v124_v8, %v128_v10 }
 0x172   :  { %v130_v12 = vmul.f32 1.442695, %v129_v11 }
 0x174   :  { %179 = vpow2.f32 %v130_v12 }
 0x181   :  { %v180_v13 = vpop.eup %179 }
 0x182   :  { %132 = vadd.xlane.f32.xlu0 %v180_v13 }
 0x20b   :  { %v133_v14 = vpop.xlane.xlu0 %132 }
 0x20c   :  { %181 = vlog2.f32 %v133_v14 }
 0x219   :  { %v182_v15 = vpop.eup %181 }
 0x21a   :  { %v135_v16 = vmul.f32 0.6931472, %v182_v15 }
 0x21c   :  { %v136_v17 = vsub.f32 %v129_v11, %v135_v16 }
 0x21e   :  { %137 = vst [vmem:[#allocation7] sm:$0xff] %v136_v17 }
 0x21f   :  { %234 = shalt.err (!%p231_p0)
}
 0x220   :  { %147 = dma.vmem_to_hbm [thread:$0]  %s145_s25, 128, %s291_s3, [#allocation4]  }
 0x221   :  { %247 = dma.done.wait [#allocation4], 128  }
 0x222   :  { %248 = vsyncadd [#allocation4], 4294967168 }
 0x223   :  { %151 = vsyncpa [#allocation3], 1 }
 0x224   :  { %152 = vsyncpa [#allocation6], 1 }
 0x225   :  { %153 = vsyncpa [#allocation4], 1 }

</bundles_post_ra>
